<compile_context>
chip_gen: v6e
topology: v6e:2x2x1
jax: 0.10.0
libtpu: 0.0.40
codegen_flags: <defaults>
</compile_context>

<pallas_src>
import functools

import jax
import jax.numpy as jnp
from jax.experimental import pallas as pl
from jax.experimental.pallas import tpu as pltpu


def _round_up(x, m):
    return ((x + m - 1) // m) * m


def _cdiv(x, m):
    return (x + m - 1) // m


def _gated_q_kernel(hidden_dim,
                    s_ref,         # (TB, S)    raw states, batch on sublanes
                    a_ref,         # (TB, A)    raw actions
                    w_s_ref,       # (S, H+1)   folded enc weight (s rows) + gate col
                    w_a_ref,       # (A, H+1)   folded enc weight (a rows) + zero gate col
                    b_enc_ref,     # (1, H+1)   folded enc bias + gate bias
                    w_heads_ref,   # (H, 2)     fused [q_normal | q_terminal] weight
                    b_heads_ref,   # (1, 2)     fused head bias
                    out_ref):      # (TB, 1)
    # Upcast activation blocks to f32 (no-op for f32 inputs, VPU cast for bf16;
    # HBM traffic was already halved by then).
    s = s_ref[...].astype(jnp.float32)
    a = a_ref[...].astype(jnp.float32)

    # Encoder + gate logit: normalization already folded into the weights, and
    # the gate projection rides along as output column H of the same matmul.
    enc = (jnp.dot(s, w_s_ref[...], preferred_element_type=jnp.float32)
           + jnp.dot(a, w_a_ref[...], preferred_element_type=jnp.float32)
           + b_enc_ref[...])                                   # (TB, H+1)

    h = jnp.maximum(enc[:, :hidden_dim], 0.0)                  # (TB, H)  ReLU
    g = jax.nn.sigmoid(enc[:, hidden_dim:hidden_dim + 1])      # (TB, 1)  gate

    # Both Q heads fused into one matmul.
    q = (jnp.dot(h, w_heads_ref[...], preferred_element_type=jnp.float32)
         + b_heads_ref[...])                                   # (TB, 2)
    q_n = q[:, 0:1]
    q_t = q[:, 1:2]

    out_ref[...] = ((1.0 - g) * q_n + g * q_t).astype(out_ref.dtype)


def gated_q_forward(s, a, params, *, tile_b=4096):
    """Forward pass. s: (B, S), a: (B, A) -> (B, 1) float32.

    s / a may be float32 or bfloat16; compute is always f32 inside the kernel.
    """
    B, S = s.shape
    A = a.shape[1]
    H = params["w_enc"].shape[1]

    xmean = params["xmean"].astype(jnp.float32)   # (S+A,)
    xstd = params["xstd"].astype(jnp.float32)     # (S+A,)
    # Guard: a zero std element would bake NaN/inf into whole folded-weight
    # rows (the PyTorch reference would also blow up; we fail soft instead).
    safe_std = jnp.where(xstd == 0.0, 1.0, xstd)
    inv_std = 1.0 / safe_std

    # ---- one-time parameter folding (normalization baked into weights) ----
    # ((x - m) * inv) @ W == x @ (inv[:,None] * W) - m @ (inv[:,None] * W)
    w_enc = params["w_enc"].astype(jnp.float32) * inv_std[:, None]     # (S+A, H)
    b_enc = params["b_enc"].astype(jnp.float32) - xmean @ w_enc        # (H,)
    w_g = params["w_g"].astype(jnp.float32) * inv_std[:S, None]        # (S, 1)
    b_g = params["b_g"].astype(jnp.float32) - xmean[:S] @ w_g          # (1,)

    # Split the encoder weight into its state / action row blocks (so s and a
    # never need to be concatenated in HBM) and append the gate projection as
    # one extra output column of the same matmul.
    w_s_ext = jnp.concatenate([w_enc[:S], w_g], axis=1)                       # (S, H+1)
    w_a_ext = jnp.concatenate([w_enc[S:], jnp.zeros((A, 1), jnp.float32)], axis=1)  # (A, H+1)
    b_enc_ext = jnp.concatenate([b_enc, b_g]).reshape(1, H + 1)               # (1, H+1)

    # Fused Q heads.
    w_heads = jnp.concatenate(
        [params["w_qn"], params["w_qt"]], axis=1).astype(jnp.float32)         # (H, 2)
    b_heads = jnp.concatenate(
        [params["b_qn"], params["b_qt"]]).astype(jnp.float32).reshape(1, 2)   # (1, 2)

    # ---- batch tiling: few large tiles, minimal padding ----
    steps = max(1, _cdiv(B, tile_b))
    tb = _round_up(max(1, _cdiv(B, steps)), 128)   # 128-aligned for any dtype packing
    b_pad = steps * tb
    if b_pad != B:
        s = jnp.pad(s, ((0, b_pad - B), (0, 0)))
        a = jnp.pad(a, ((0, b_pad - B), (0, 0)))

    # Explicit VMEM budget: double-buffered s/a/out blocks are lane-padded to
    # 128, ~3 KiB/sample total; leave 2x headroom for compiler scratch.  Cap
    # below v7x physical (64 MiB) and above v5e's 16 MiB scoped default.
    est_block_bytes = 2 * 3 * tb * 128 * 4
    vmem_limit = int(min(64 << 20, max(32 << 20, 2 * est_block_bytes)))

    kernel = functools.partial(_gated_q_kernel, H)

    out = pl.pallas_call(
        kernel,
        out_shape=jax.ShapeDtypeStruct((b_pad, 1), jnp.float32),
        grid_spec=pltpu.PrefetchScalarGridSpec(
            num_scalar_prefetch=0,
            grid=(steps,),
            in_specs=[
                pl.BlockSpec((tb, S), lambda i: (i, 0)),      # activations: tiled over batch
                pl.BlockSpec((tb, A), lambda i: (i, 0)),
                pl.BlockSpec((S, H + 1), lambda i: (0, 0)),   # weights: VMEM-resident
                pl.BlockSpec((A, H + 1), lambda i: (0, 0)),
                pl.BlockSpec((1, H + 1), lambda i: (0, 0)),
                pl.BlockSpec((H, 2), lambda i: (0, 0)),
                pl.BlockSpec((1, 2), lambda i: (0, 0)),
            ],
            out_specs=pl.BlockSpec((tb, 1), lambda i: (i, 0)),
        ),
        compiler_params=pltpu.CompilerParams(
            dimension_semantics=("parallel",),
            vmem_limit_bytes=vmem_limit,
        ),
    )(s, a, w_s_ext, w_a_ext, b_enc_ext, w_heads, b_heads)

    return out[:B]                                                            # (B, 1)


def init_params(key, state_dim, action_dim, hidden_dim):
    """Deterministic synthetic parameter init (shapes follow nn.Linear)."""
    ks = jax.random.split(key, 8)
    in_dim = state_dim + action_dim

    def lin_init(k, fan_in, shape):
        bound = 1.0 / jnp.sqrt(fan_in)
        return jax.random.uniform(k, shape, jnp.float32, -bound, bound)

    params = {
        "w_enc": lin_init(ks[0], in_dim, (in_dim, hidden_dim)),
        "b_enc": lin_init(ks[1], in_dim, (hidden_dim,)),
        "w_qn": lin_init(ks[2], hidden_dim, (hidden_dim, 1)),
        "b_qn": lin_init(ks[3], hidden_dim, (1,)),
        "w_qt": lin_init(ks[4], hidden_dim, (hidden_dim, 1)),
        "b_qt": lin_init(ks[5], hidden_dim, (1,)),
        "w_g": lin_init(ks[6], state_dim, (state_dim, 1)),
        "b_g": lin_init(ks[7], state_dim, (1,)),
        # Normalization stats (xMean / xStd in the PyTorch module).
        "xmean": jnp.linspace(-0.5, 0.5, in_dim, dtype=jnp.float32),
        "xstd": jnp.linspace(0.5, 1.5, in_dim, dtype=jnp.float32),
    }
    return params


def reference_forward(s, a, params):
    """Pure-JAX reference of the PyTorch module for a sanity check."""
    state_dim = s.shape[1]
    s_n = (s - params["xmean"][:state_dim]) / params["xstd"][:state_dim]
    a_n = (a - params["xmean"][state_dim:]) / params["xstd"][state_dim:]
    sa = jnp.concatenate([s_n, a_n], axis=-1)
    h = jax.nn.relu(sa @ params["w_enc"] + params["b_enc"])
    q_n = h @ params["w_qn"] + params["b_qn"]
    q_t = h @ params["w_qt"] + params["b_qt"]
    g = jax.nn.sigmoid(s_n @ params["w_g"] + params["b_g"])
    return (1.0 - g) * q_n + g * q_t


if __name__ == "__main__":
    key = jax.random.PRNGKey(0)
    k_s, k_a, k_p = jax.random.split(key, 3)

    batch = 8
    state_dim = 6
    action_dim = 2
    hidden_dim = 32

    s = jax.random.normal(k_s, (batch, state_dim), jnp.float32)
    a = jax.random.normal(k_a, (batch, action_dim), jnp.float32)
    params = init_params(k_p, state_dim, action_dim, hidden_dim)

    # float32 activation path
    q = jax.block_until_ready(gated_q_forward(s, a, params))
    q_ref = reference_forward(s, a, params)
    assert q.shape == (batch, 1)
    # Folding the normalization into the weights changes rounding order
    # slightly; use a 1e-4 tolerance.
    assert jnp.allclose(q, q_ref, atol=1e-4, rtol=1e-4), (q, q_ref)

    # bfloat16 activation path (halves the dominant HBM stream when the caller
    # already holds bf16 data); compute is still f32 inside the kernel.
    s16 = s.astype(jnp.bfloat16)
    a16 = a.astype(jnp.bfloat16)
    q16 = jax.block_until_ready(gated_q_forward(s16, a16, params))
    q16_ref = reference_forward(s16.astype(jnp.float32), a16.astype(jnp.float32), params)
    assert q16.shape == (batch, 1)
    assert jnp.allclose(q16, q16_ref, atol=1e-3, rtol=1e-3), (q16, q16_ref)

    print("KERNEL_OK")
</pallas_src>

<mosaic_0001>
module attributes {stable_mosaic.version = 11 : i64} {
  func.func @_gated_q_kernel(%arg0: i32, %arg1: memref<128x6xf32, #tpu.memory_space<vmem>>, %arg2: memref<128x2xf32, #tpu.memory_space<vmem>>, %arg3: memref<6x33xf32, #tpu.memory_space<vmem>>, %arg4: memref<2x33xf32, #tpu.memory_space<vmem>>, %arg5: memref<1x33xf32, #tpu.memory_space<vmem>>, %arg6: memref<32x2xf32, #tpu.memory_space<vmem>>, %arg7: memref<1x2xf32, #tpu.memory_space<vmem>>, %arg8: memref<128x1xf32, #tpu.memory_space<vmem>>) attributes {dimension_semantics = [#tpu.dimension_semantics<parallel>], iteration_bounds = array<i64: 1>, scalar_prefetch = 0 : i64, scratch_operands = 0 : i64, tpu.core_type = #tpu.core_type<tc>, window_params = [{transform_indices = @transform_0, window_bounds = array<i64: 128, 6>}, {transform_indices = @transform_1, window_bounds = array<i64: 128, 2>}, {pipeline_mode = #tpu.pipeline_mode<synchronous>, transform_indices = @transform_2, window_bounds = array<i64: 6, 33>}, {pipeline_mode = #tpu.pipeline_mode<synchronous>, transform_indices = @transform_3, window_bounds = array<i64: 2, 33>}, {pipeline_mode = #tpu.pipeline_mode<synchronous>, transform_indices = @transform_4, window_bounds = array<i64: 1, 33>}, {pipeline_mode = #tpu.pipeline_mode<synchronous>, transform_indices = @transform_5, window_bounds = array<i64: 32, 2>}, {pipeline_mode = #tpu.pipeline_mode<synchronous>, transform_indices = @transform_6, window_bounds = array<i64: 1, 2>}, {transform_indices = @transform_7, window_bounds = array<i64: 128, 1>}]} {
    %c0 = arith.constant 0 : index
    %c0_0 = arith.constant 0 : index
    %0 = vector.load %arg1[%c0, %c0_0] : memref<128x6xf32, #tpu.memory_space<vmem>>, vector<128x6xf32>
    %c0_1 = arith.constant 0 : index
    %c0_2 = arith.constant 0 : index
    %1 = vector.load %arg2[%c0_1, %c0_2] : memref<128x2xf32, #tpu.memory_space<vmem>>, vector<128x2xf32>
    %c0_3 = arith.constant 0 : index
    %c0_4 = arith.constant 0 : index
    %2 = vector.load %arg3[%c0_3, %c0_4] : memref<6x33xf32, #tpu.memory_space<vmem>>, vector<6x33xf32>
    %cst = arith.constant dense<0.000000e+00> : vector<128x33xf32>
    %3 = tpu.matmul %0, %2, %cst {dimension_numbers = #tpu.dot_dimension_numbers<[1], [0], [0], [1], [0, 0, 1, 1], [], []>} : vector<128x6xf32>, vector<6x33xf32>, vector<128x33xf32> -> vector<128x33xf32>
    %c0_5 = arith.constant 0 : index
    %c0_6 = arith.constant 0 : index
    %4 = vector.load %arg4[%c0_5, %c0_6] : memref<2x33xf32, #tpu.memory_space<vmem>>, vector<2x33xf32>
    %cst_7 = arith.constant dense<0.000000e+00> : vector<128x33xf32>
    %5 = tpu.matmul %1, %4, %cst_7 {dimension_numbers = #tpu.dot_dimension_numbers<[1], [0], [0], [1], [0, 0, 1, 1], [], []>} : vector<128x2xf32>, vector<2x33xf32>, vector<128x33xf32> -> vector<128x33xf32>
    %6 = arith.addf %3, %5 : vector<128x33xf32>
    %c0_8 = arith.constant 0 : index
    %c0_9 = arith.constant 0 : index
    %7 = vector.load %arg5[%c0_8, %c0_9] : memref<1x33xf32, #tpu.memory_space<vmem>>, vector<1x33xf32>
    %8 = vector.broadcast %7 : vector<1x33xf32> to vector<128x33xf32>
    %9 = arith.addf %6, %8 : vector<128x33xf32>
    %10 = vector.extract_strided_slice %9 {offsets = [0, 0], sizes = [128, 32], strides = [1, 1]} : vector<128x33xf32> to vector<128x32xf32>
    %cst_10 = arith.constant 0.000000e+00 : f32
    %11 = vector.broadcast %cst_10 : f32 to vector<128x32xf32>
    %12 = arith.maximumf %10, %11 : vector<128x32xf32>
    %13 = vector.extract_strided_slice %9 {offsets = [0, 32], sizes = [128, 1], strides = [1, 1]} : vector<128x33xf32> to vector<128x1xf32>
    %14 = arith.negf %13 : vector<128x1xf32>
    %15 = math.exp %14 : vector<128x1xf32>
    %cst_11 = arith.constant 1.000000e+00 : f32
    %16 = vector.broadcast %cst_11 : f32 to vector<128x1xf32>
    %17 = arith.addf %16, %15 : vector<128x1xf32>
    %18 = arith.divf %16, %17 : vector<128x1xf32>
    %c0_12 = arith.constant 0 : index
    %c0_13 = arith.constant 0 : index
    %19 = vector.load %arg6[%c0_12, %c0_13] : memref<32x2xf32, #tpu.memory_space<vmem>>, vector<32x2xf32>
    %cst_14 = arith.constant dense<0.000000e+00> : vector<128x2xf32>
    %20 = tpu.matmul %12, %19, %cst_14 {dimension_numbers = #tpu.dot_dimension_numbers<[1], [0], [0], [1], [0, 0, 1, 1], [], []>} : vector<128x32xf32>, vector<32x2xf32>, vector<128x2xf32> -> vector<128x2xf32>
    %c0_15 = arith.constant 0 : index
    %c0_16 = arith.constant 0 : index
    %21 = vector.load %arg7[%c0_15, %c0_16] : memref<1x2xf32, #tpu.memory_space<vmem>>, vector<1x2xf32>
    %22 = vector.broadcast %21 : vector<1x2xf32> to vector<128x2xf32>
    %23 = arith.addf %20, %22 : vector<128x2xf32>
    %24 = vector.extract_strided_slice %23 {offsets = [0, 0], sizes = [128, 1], strides = [1, 1]} : vector<128x2xf32> to vector<128x1xf32>
    %25 = vector.extract_strided_slice %23 {offsets = [0, 1], sizes = [128, 1], strides = [1, 1]} : vector<128x2xf32> to vector<128x1xf32>
    %cst_17 = arith.constant 1.000000e+00 : f32
    %26 = vector.broadcast %cst_17 : f32 to vector<128x1xf32>
    %27 = arith.subf %26, %18 : vector<128x1xf32>
    %28 = arith.mulf %27, %24 : vector<128x1xf32>
    %29 = arith.mulf %18, %25 : vector<128x1xf32>
    %30 = arith.addf %28, %29 : vector<128x1xf32>
    %c0_18 = arith.constant 0 : index
    %c0_19 = arith.constant 0 : index
    %31 = vector.load %arg8[%c0_18, %c0_19] : memref<128x1xf32, #tpu.memory_space<vmem>>, vector<128x1xf32>
    tpu.vector_store %arg8[%c0_18, %c0_19], %30 {strides = array<i32>} : memref<128x1xf32, #tpu.memory_space<vmem>>, vector<128x1xf32>,
    return
  }
  func.func @transform_0(%arg0: i32) -> (i32, i32) {
    %c0_i32 = arith.constant 0 : i32
    %c0_i32_0 = arith.constant 0 : i32
    return %arg0, %c0_i32 : i32, i32
  }
  func.func @transform_1(%arg0: i32) -> (i32, i32) {
    %c0_i32 = arith.constant 0 : i32
    %c0_i32_0 = arith.constant 0 : i32
    return %arg0, %c0_i32 : i32, i32
  }
  func.func @transform_2(%arg0: i32) -> (i32, i32) {
    %c0_i32 = arith.constant 0 : i32
    %c0_i32_0 = arith.constant 0 : i32
    %c0_i32_1 = arith.constant 0 : i32
    return %c0_i32, %c0_i32_0 : i32, i32
  }
  func.func @transform_3(%arg0: i32) -> (i32, i32) {
    %c0_i32 = arith.constant 0 : i32
    %c0_i32_0 = arith.constant 0 : i32
    %c0_i32_1 = arith.constant 0 : i32
    return %c0_i32, %c0_i32_0 : i32, i32
  }
  func.func @transform_4(%arg0: i32) -> (i32, i32) {
    %c0_i32 = arith.constant 0 : i32
    %c0_i32_0 = arith.constant 0 : i32
    %c0_i32_1 = arith.constant 0 : i32
    return %c0_i32, %c0_i32_0 : i32, i32
  }
  func.func @transform_5(%arg0: i32) -> (i32, i32) {
    %c0_i32 = arith.constant 0 : i32
    %c0_i32_0 = arith.constant 0 : i32
    %c0_i32_1 = arith.constant 0 : i32
    return %c0_i32, %c0_i32_0 : i32, i32
  }
  func.func @transform_6(%arg0: i32) -> (i32, i32) {
    %c0_i32 = arith.constant 0 : i32
    %c0_i32_0 = arith.constant 0 : i32
    %c0_i32_1 = arith.constant 0 : i32
    return %c0_i32, %c0_i32_0 : i32, i32
  }
  func.func @transform_7(%arg0: i32) -> (i32, i32) {
    %c0_i32 = arith.constant 0 : i32
    %c0_i32_0 = arith.constant 0 : i32
    return %arg0, %c0_i32 : i32, i32
  }
}

</mosaic_0001>

<bundles_post_ra>
// kernel: tpu_custom_call.1
= control target key start
LH: loop header
LB: loop body
LE: loop exit
PB: predicated region body
PF: predicated region fallthrough
CT: control target
= control target key end

     0   :  { %vm109_vm0 = vcmask 1041408   ;;  %vm60_vm1 = vcmask 15360   ;;  %vm307_vm2 = vcmask 1045504   ;;  %vm258_vm3 = vcmask 48128   ;;  %s1332_s24 = smov 31   ;;  %s1333_s25 = smov 32   ;;  %s1756_s3 = inlined_call_operand.vmem [shape: f32[2,33], index: 3, kind: input, shape index: {}]   ;;  %s1757_s1 = inlined_call_operand.vmem [shape: f32[128,2], index: 1, kind: input, shape index: {}]   ;;  %s1758_s2 = inlined_call_operand.vmem [shape: f32[6,33], index: 2, kind: input, shape index: {}]   ;;  %s1759_s0 = inlined_call_operand.vmem [shape: f32[128,6], index: 0, kind: input, shape index: {}]   ;;  %s1760_s5 = inlined_call_operand.vmem [shape: f32[32,2], index: 5, kind: input, shape index: {}]   ;;  %s1761_s4 = inlined_call_operand.vmem [shape: f32[1,33], index: 4, kind: input, shape index: {}]   ;;  %s1762_s6 = inlined_call_operand.vmem [shape: f32[1,2], index: 6, kind: input, shape index: {}]   ;;  %s1763_s7 = inlined_call_operand.vmem [shape: f32[128,1], index: 7, kind: output, shape index: {}]  }
   0x1   :  { %v59_v0 = vld [vmem:[%s1756_s3] sm:$0x3]  ;;  %v51_v2 = vld [vmem:[%s1757_s1 + $0x48] sm:$0xff]  ;;  %v52_v4 = vld [vmem:[%s1757_s1 + $0x50] sm:$0xff]  ;;  %vm602_vm4 = vcmask 261120   ;;  %vm1036_vm5 = vcmask 7168  }
   0x2   :  { %v50_v1 = vld [vmem:[%s1757_s1 + $0x40] sm:$0xff]  ;;  %1263 = vmatprep.subr.msk.mxu1 %vm109_vm0, %v59_v0  ;;  %1179 = vmatprep.subr.msk.mxu0 %vm109_vm0, %v59_v0  ;;  %v43_v6 = vld [vmem:[%s1757_s1 + $0x8] sm:$0xff]  ;;  %v53_v7 = vld [vmem:[%s1757_s1 + $0x58] sm:$0xff] }
   0x3   :  { %1193 = vmatprep.mubr.msk.f32.mxu1 %vm60_vm1, %v50_v1  ;;  %v58_v3 = vld [vmem:[%s1758_s2] sm:$0x3f]  ;;  %1264 = vmatpush3.msk.msra.mxu1 %vm109_vm0, %v59_v0  ;;  %v44_v8 = vld [vmem:[%s1757_s1 + $0x10] sm:$0xff]  ;;  %v45_v10 = vld [vmem:[%s1757_s1 + $0x18] sm:$0xff] }
   0x4   :  { %1194 = vmatmul.mubr.msk.f32.vlgmr.msra.gmra.mxu1 %vm60_vm1, %v51_v2  ;;  %1205 = vmatprep.subr.msk.mxu1 %vm307_vm2, %v58_v3  ;;  %v42_v5 = vld [vmem:[%s1757_s1] sm:$0xff]  ;;  %v55_v11 = vld [vmem:[%s1757_s1 + $0x68] sm:$0xff]  ;;  %v56_v13 = vld [vmem:[%s1757_s1 + $0x70] sm:$0xff] }
   0x5   :  { %1206 = vmatpush3.msk.msra.mxu1 %vm307_vm2, %v58_v3  ;;  %1196 = vmatprep.mubr.msk.f32.mxu1 %vm60_vm1, %v52_v4  ;;  %v54_v9 = vld [vmem:[%s1757_s1 + $0x60] sm:$0xff]  ;;  %v47_v14 = vld [vmem:[%s1757_s1 + $0x28] sm:$0xff]  ;;  %v57_v15 = vld [vmem:[%s1757_s1 + $0x78] sm:$0xff] }
   0x6   :  { %1180 = vmatpush3.msk.msra.mxu0 %vm109_vm0, %v59_v0  ;;  %1181 = vmatprep.mubr.msk.f32.mxu0 %vm60_vm1, %v42_v5  ;;  %v46_v12 = vld [vmem:[%s1757_s1 + $0x20] sm:$0xff]  ;;  %v48_v16 = vld [vmem:[%s1757_s1 + $0x30] sm:$0xff]  ;;  %v49_v18 = vld [vmem:[%s1757_s1 + $0x38] sm:$0xff] }
   0x7   :  { %1182 = vmatmul.mubr.msk.f32.vlgmr.msra.gmra.mxu0 %vm60_vm1, %v43_v6  ;;  %v26_v17 = vld [vmem:[%s1759_s0] sm:$0xff]  ;;  %v27_v19 = vld [vmem:[%s1759_s0 + $0x8] sm:$0xff]  ;;  %v28_v20 = vld [vmem:[%s1759_s0 + $0x10] sm:$0xff] }
   0x8   :  { %1197 = vmatmul.mubr.msk.f32.gmra.mxu1 %vm60_vm1, %v53_v7  ;;  %1184 = vmatprep.mubr.msk.f32.mxu0 %vm60_vm1, %v44_v8  ;;  %v29_v21 = vld [vmem:[%s1759_s0 + $0x18] sm:$0xff]  ;;  %v30_v22 = vld [vmem:[%s1759_s0 + $0x20] sm:$0xff]  ;;  %v31_v23 = vld [vmem:[%s1759_s0 + $0x28] sm:$0xff] }
   0x9   :  { %1199 = vmatprep.mubr.msk.f32.mxu1 %vm60_vm1, %v54_v9  ;;  %v32_v24 = vld [vmem:[%s1759_s0 + $0x30] sm:$0xff]  ;;  %v33_v25 = vld [vmem:[%s1759_s0 + $0x38] sm:$0xff]  ;;  %v34_v26 = vld [vmem:[%s1759_s0 + $0x40] sm:$0xff] }
   0xa   :  { %v35_v27 = vld [vmem:[%s1759_s0 + $0x48] sm:$0xff]  ;;  %v36_v28 = vld [vmem:[%s1759_s0 + $0x50] sm:$0xff]  ;;  %v37_v29 = vld [vmem:[%s1759_s0 + $0x58] sm:$0xff] }
   0xb   :  { %1185 = vmatmul.mubr.msk.f32.gmra.mxu0 %vm60_vm1, %v45_v10  ;;  %v38_v30 = vld [vmem:[%s1759_s0 + $0x60] sm:$0xff]  ;;  %v39_v31 = vld [vmem:[%s1759_s0 + $0x68] sm:$0xff]  ;;  %v40_v32 = vld [vmem:[%s1759_s0 + $0x70] sm:$0xff] }
   0xc   :  { %1200 = vmatmul.mubr.msk.f32.gmra.mxu1 %vm60_vm1, %v55_v11  ;;  %1187 = vmatprep.mubr.msk.f32.mxu0 %vm60_vm1, %v46_v12  ;;  %v41_v33 = vld [vmem:[%s1759_s0 + $0x78] sm:$0xff]  ;;  %v593_v35 = vld [vmem:[%s1760_s5 + $0x10] sm:$0xff]  ;;  %v592_v36 = vld [vmem:[%s1760_s5 + $0x8] sm:$0xff] }
   0xd   :  { %1202 = vmatprep.mubr.msk.f32.mxu1 %vm60_vm1, %v56_v13  ;;  %v594_v34 = vld [vmem:[%s1760_s5 + $0x18] sm:$0xff]  ;;  %v591_v37 = vld [vmem:[%s1760_s5] sm:$0xff] }
   0xe   :  { %1231 = vmatprep.subr.mxu0 %v594_v34  ;;  %v1538_v52 = vld [vmem:[%s1761_s4] ss:$0 sm:$0xff] }
   0xf   :  { %1188 = vmatmul.mubr.msk.f32.gmra.mxu0 %vm60_vm1, %v47_v14 }
  0x10   :  { %1203 = vmatmul.mubr.msk.f32.gmra.mxu1 %vm60_vm1, %v57_v15  ;;  %1190 = vmatprep.mubr.msk.f32.mxu0 %vm60_vm1, %v48_v16 }
  0x11   :  { %1207 = vmatprep.mubr.msk.f32.mxu1 %vm258_vm3, %v26_v17  ;;  %1232 = vmatpush3.msra.mxu0 %v594_v34 }
  0x12   :  { %1233 = vmatprep.subr.mxu0 %v593_v35 }
  0x13   :  { %1191 = vmatmul.mubr.msk.f32.gmra.mxu0 %vm60_vm1, %v49_v18 }
  0x14   :  { %1208 = vmatmul.mubr.msk.f32.vlgmr.msra.gmra.mxu1 %vm258_vm3, %v27_v19  ;;  %1234 = vmatpush3.msra.mxu0 %v593_v35 }
  0x15   :  { %1210 = vmatprep.mubr.msk.f32.mxu1 %vm258_vm3, %v28_v20  ;;  %1235 = vmatprep.subr.mxu0 %v592_v36 }
  0x16   :  { %1236 = vmatpush3.msra.mxu0 %v592_v36 }
  0x17   :  { %1237 = vmatprep.subr.mxu0 %v591_v37 }
  0x18   :  { %1211 = vmatmul.mubr.msk.f32.gmra.mxu1 %vm258_vm3, %v29_v21  ;;  %1238 = vmatpush3.msra.mxu0 %v591_v37 }
  0x19   :  { %1213 = vmatprep.mubr.msk.f32.mxu1 %vm258_vm3, %v30_v22 }
  0x1c   :  { %1214 = vmatmul.mubr.msk.f32.gmra.mxu1 %vm258_vm3, %v31_v23 }
  0x1d   :  { %1216 = vmatprep.mubr.msk.f32.mxu1 %vm258_vm3, %v32_v24 }
  0x20   :  { %1217 = vmatmul.mubr.msk.f32.gmra.mxu1 %vm258_vm3, %v33_v25 }
  0x21   :  { %1219 = vmatprep.mubr.msk.f32.mxu1 %vm258_vm3, %v34_v26 }
  0x24   :  { %1220 = vmatmul.mubr.msk.f32.gmra.mxu1 %vm258_vm3, %v35_v27 }
  0x25   :  { %1222 = vmatprep.mubr.msk.f32.mxu1 %vm258_vm3, %v36_v28 }
  0x28   :  { %1223 = vmatmul.mubr.msk.f32.gmra.mxu1 %vm258_vm3, %v37_v29 }
  0x29   :  { %1225 = vmatprep.mubr.msk.f32.mxu1 %vm258_vm3, %v38_v30 }
  0x2c   :  { %1226 = vmatmul.mubr.msk.f32.gmra.mxu1 %vm258_vm3, %v39_v31 }
  0x2d   :  { %1228 = vmatprep.mubr.msk.f32.mxu1 %vm258_vm3, %v40_v32 }
  0x30   :  { %1229 = vmatmul.mubr.msk.f32.gmra.mxu1 %vm258_vm3, %v41_v33 }
  0xc4   :  { %v1195_v38 = vpop.f32.mrf.mxu1 }
  0xc6   :  { %v219_v39 = vpop.f32.mrf.mxu1 }
  0xc7   :  { %v1183_v40 = vpop.f32.mrf.mxu0 }
  0xc8   :  { %v1198_v41 = vpop.f32.mrf.mxu1 }
  0xc9   :  { %v179_v43 = vpop.f32.mrf.mxu0 }
  0xca   :  { %v1525_v42 = vpop.f32.mrf.mxu1 }
  0xcb   :  { %v1186_v46 = vpop.f32.mrf.mxu0 }
  0xcc   :  { %v1527_v44 = vpop.f32.mrf.mxu1 }
  0xcd   :  { %v189_v49 = vpop.f32.mrf.mxu0 }
  0xce   :  { %v1529_v45 = vpop.f32.mrf.mxu1 }
  0xcf   :  { %v1189_v53 = vpop.f32.mrf.mxu0 }
  0xd0   :  { %v1531_v47 = vpop.f32.mrf.mxu1 }
  0xd1   :  { %v199_v60 = vpop.f32.mrf.mxu0 }
  0xd2   :  { %v1533_v48 = vpop.f32.mrf.mxu1 }
  0xd3   :  { %v1192_v4 = vpop.f32.mrf.mxu0 }
  0xd4   :  { %v1209_v50 = vpop.f32.mrf.mxu1 }
  0xd5   :  { %v383_v51 = vadd.f32 %v1209_v50, %v1183_v40  ;;  %v209_v14 = vpop.f32.mrf.mxu0 }
  0xd6   :  { %v377_v54 = vpop.f32.mrf.mxu1 }
  0xd7   :  { %v378_v55 = vadd.f32 %v377_v54, %v179_v43  ;;  %v1541_v56 = vadd.f32 %v1538_v52, %v383_v51 }
  0xd8   :  { %v1212_v57 = vpop.f32.mrf.mxu1 }
  0xd9   :  { %v1544_v58 = vadd.f32 %v1538_v52, %v378_v55  ;;  %v393_v59 = vadd.f32 %v1212_v57, %v1186_v46  ;;  %v480_v63 = vmax.f32 %v1541_v56, 0.0 }
  0xda   :  { %v387_v61 = vpop.f32.mrf.mxu1 }
  0xdb   :  { %v479_v62 = vmax.f32 %v1544_v58, 0.0  ;;  %v388_v0 = vadd.f32 %v387_v61, %v189_v49  ;;  %v1549_v2 = vadd.f32 %v1538_v52, %v393_v59 }
  0xdc   :  { %v1215_v1 = vpop.f32.mrf.mxu1 }
  0xdd   :  { %v403_v3 = vadd.f32 %v1215_v1, %v1189_v53  ;;  %1239 = vmatprep.mubr.msk.f32.mxu0 %vm602_vm4, %v479_v62  ;;  %v1553_v5 = vadd.f32 %v1538_v52, %v388_v0  ;;  %v482_v11 = vmax.f32 %v1549_v2, 0.0 }
  0xde   :  { %v397_v6 = vpop.f32.mrf.mxu1  ;;  %1240 = vmatmul.mubr.msk.f32.vlgmr.msra.gmra.mxu0 %vm602_vm4, %v480_v63 }
  0xdf   :  { %v1557_v7 = vadd.f32 %v1538_v52, %v403_v3  ;;  %v398_v8 = vadd.f32 %v397_v6, %v199_v60  ;;  %v481_v9 = vmax.f32 %v1553_v5, 0.0 }
  0xe0   :  { %v1218_v10 = vpop.f32.mrf.mxu1 }
  0xe1   :  { %v1562_v12 = vadd.f32 %v1538_v52, %v398_v8  ;;  %v413_v13 = vadd.f32 %v1218_v10, %v1192_v4  ;;  %1242 = vmatprep.mubr.msk.f32.mxu0 %vm602_vm4, %v481_v9  ;;  %v484_v16 = vmax.f32 %v1557_v7, 0.0 }
  0xe2   :  { %v407_v15 = vpop.f32.mrf.mxu1  ;;  %1243 = vmatmul.mubr.msk.f32.gmra.mxu0 %vm602_vm4, %v482_v11 }
  0xe3   :  { %v483_v17 = vmax.f32 %v1562_v12, 0.0  ;;  %v1568_v18 = vadd.f32 %v1538_v52, %v413_v13  ;;  %v408_v19 = vadd.f32 %v407_v15, %v209_v14 }
  0xe4   :  { %v1221_v20 = vpop.f32.mrf.mxu1 }
  0xe5   :  { %v423_v21 = vadd.f32 %v1221_v20, %v1195_v38  ;;  %1245 = vmatprep.mubr.msk.f32.mxu0 %vm602_vm4, %v483_v17  ;;  %v1573_v22 = vadd.f32 %v1538_v52, %v408_v19  ;;  %v486_v24 = vmax.f32 %v1568_v18, 0.0 }
  0xe6   :  { %v417_v23 = vpop.f32.mrf.mxu1  ;;  %1246 = vmatmul.mubr.msk.f32.gmra.mxu0 %vm602_vm4, %v484_v16 }
  0xe7   :  { %v418_v25 = vadd.f32 %v417_v23, %v219_v39  ;;  %v485_v26 = vmax.f32 %v1573_v22, 0.0  ;;  %v1579_v28 = vadd.f32 %v1538_v52, %v423_v21 }
  0xe8   :  { %v1224_v27 = vpop.f32.mrf.mxu1 }
  0xe9   :  { %v1582_v29 = vadd.f32 %v1538_v52, %v418_v25  ;;  %v433_v30 = vadd.f32 %v1224_v27, %v1198_v41  ;;  %1248 = vmatprep.mubr.msk.f32.mxu0 %vm602_vm4, %v485_v26  ;;  %v488_v35 = vmax.f32 %v1579_v28, 0.0 }
  0xea   :  { %v427_v31 = vpop.f32.mrf.mxu1  ;;  %1249 = vmatmul.mubr.msk.f32.gmra.mxu0 %vm602_vm4, %v486_v24 }
  0xeb   :  { %v487_v32 = vmax.f32 %v1582_v29, 0.0  ;;  %v428_v33 = vadd.f32 %v427_v31, %v1525_v42  ;;  %v1590_v36 = vadd.f32 %v1538_v52, %v433_v30 }
  0xec   :  { %v1227_v34 = vpop.f32.mrf.mxu1 }
  0xed   :  { %v443_v37 = vadd.f32 %v1227_v34, %v1527_v44  ;;  %1251 = vmatprep.mubr.msk.f32.mxu0 %vm602_vm4, %v487_v32  ;;  %v1595_v38 = vadd.f32 %v1538_v52, %v428_v33  ;;  %v490_v43 = vmax.f32 %v1590_v36, 0.0  ;;  %v1093_v34 = vmul.f32 -1.442695, %v1541_v56 }
  0xee   :  { %v437_v39 = vpop.f32.mrf.mxu1  ;;  %1252 = vmatmul.mubr.msk.f32.gmra.mxu0 %vm602_vm4, %v488_v35  ;;  %v1092_v35 = vmul.f32 -1.442695, %v1544_v58  ;;  %v1099_v58 = vmul.f32 -1.442695, %v1568_v18 }
  0xef   :  { %v438_v40 = vadd.f32 %v437_v39, %v1529_v45  ;;  %v489_v41 = vmax.f32 %v1595_v38, 0.0  ;;  %v1602_v46 = vadd.f32 %v1538_v52, %v443_v37  ;;  %1268 = vpow2.f32 %v1093_v34 }
  0xf0   :  { %v1230_v42 = vpop.f32.mrf.mxu1  ;;  %v1095_v37 = vmul.f32 -1.442695, %v1549_v2  ;;  %1270 = vpow2.f32 %v1092_v35  ;;  %v1094_v39 = vmul.f32 -1.442695, %v1553_v5  ;;  %v1098_v2 = vmul.f32 -1.442695, %v1573_v22 }
  0xf1   :  { %v1605_v44 = vadd.f32 %v1538_v52, %v438_v40  ;;  %v453_v49 = vadd.f32 %v1230_v42, %v1531_v47  ;;  %1254 = vmatprep.mubr.msk.f32.mxu0 %vm602_vm4, %v489_v41  ;;  %v492_v53 = vmax.f32 %v1602_v46, 0.0  ;;  %v1096_v41 = vmul.f32 -1.442695, %v1562_v12 }
  0xf2   :  { %v447_v50 = vpop.f32.mrf.mxu1  ;;  %1255 = vmatmul.mubr.msk.f32.gmra.mxu0 %vm602_vm4, %v490_v43  ;;  %1272 = vpow2.f32 %v1095_v37  ;;  %v1097_v43 = vmul.f32 -1.442695, %v1557_v7  ;;  %v1100_v7 = vmul.f32 -1.442695, %v1582_v29 }
  0xf3   :  { %v491_v45 = vmax.f32 %v1605_v44, 0.0  ;;  %v448_v51 = vadd.f32 %v447_v50, %v1533_v48  ;;  %v1614_v54 = vadd.f32 %v1538_v52, %v453_v49  ;;  %v1108_v48 = vld [vmem:[%s1762_s6] ss:$0 sm:$0xff]  ;;  %1274 = vpow2.f32 %v1094_v39  ;;  %s1334_s6 = smov 96  }
  0xf4   :  { %1276 = vpow2.f32 %v1096_v41 }
  0xf5   :  { %1257 = vmatprep.mubr.msk.f32.mxu0 %vm602_vm4, %v491_v45  ;;  %v1618_v55 = vadd.f32 %v1538_v52, %v448_v51  ;;  %v494_v57 = vmax.f32 %v1614_v54, 0.0 }
  0xf6   :  { %1258 = vmatmul.mubr.msk.f32.gmra.mxu0 %vm602_vm4, %v492_v53 }
  0xf7   :  { %v493_v47 = vmax.f32 %v1618_v55, 0.0 }
  0xf9   :  { %1260 = vmatprep.mubr.msk.f32.mxu0 %vm602_vm4, %v493_v47  ;;  %v1101_v47 = vmul.f32 -1.442695, %v1579_v28  ;;  %v1103_v28 = vmul.f32 -1.442695, %v1590_v36  ;;  %v1104_v36 = vmul.f32 -1.442695, %v1605_v44 }
  0xfa   :  { %1261 = vmatmul.mubr.msk.f32.gmra.mxu0 %vm602_vm4, %v494_v57 }
  0xfc   :  { %v1269_v40 = vpop.eup %1268 }
  0xfd   :  { %v544_v42 = vadd.f32 1.0, %v1269_v40  ;;  %v1271_v49 = vpop.eup %1270  ;;  %v1106_v40 = vmul.f32 -1.442695, %v1618_v55 }
  0xfe   :  { %v543_v50 = vadd.f32 1.0, %v1271_v49 }
  0xff   :  { %1278 = vrcp.f32 %v544_v42  ;;  %v1273_v56 = vpop.eup %1272 }
 0x100   :  { %1280 = vpow2.f32 %v1097_v43  ;;  %v546_v45 = vadd.f32 1.0, %v1273_v56  ;;  %v1275_v51 = vpop.eup %1274  ;;  %v1107_v43 = vmul.f32 -1.442695, %v1614_v54 }
 0x101   :  { %1282 = vpow2.f32 %v1099_v58  ;;  %v545_v5 = vadd.f32 1.0, %v1275_v51  ;;  %v1277_v12 = vpop.eup %1276 }
 0x102   :  { %1284 = vpow2.f32 %v1098_v2 }
 0x103   :  { %1286 = vrcp.f32 %v543_v50 }
 0x104   :  { %1288 = vrcp.f32 %v546_v45 }
 0x105   :  { %1290 = vrcp.f32 %v545_v5 }
 0x106   :  { %1292 = vpow2.f32 %v1100_v7 }
 0x107   :  { %1294 = vpow2.f32 %v1101_v47 }
 0x10c   :  { %v1279_v53 = vpop.eup %1278 }
 0x10d   :  { %v1281_v57 = vpop.eup %1280  ;;  %v797_v18 = vsub.f32 1.0, %v1279_v53 }
 0x10e   :  { %v548_v22 = vadd.f32 1.0, %v1281_v57 }
 0x19e   :  { %v1241_v59 = vpop.f32.mrf.mxu0 }
 0x19f   :  { %v723_v60 = vadd.f32 %v1241_v59, %v1108_v48 }
 0x1a0   :  { %v717_v61 = vpop.f32.mrf.mxu0 }
 0x1a1   :  { %894 = vrot.lane.b32.xlu1 %v723_v60, %s1332_s24  ;;  %830 = vrot.lane.b32.xlu0 %v723_v60, %s1333_s25  ;;  %v718_v52 = vadd.f32 %v1108_v48, %v717_v61 }
 0x1a2   :  { %v1244_v62 = vpop.f32.mrf.mxu0 }
 0x1a3   :  { %v733_v63 = vadd.f32 %v1244_v62, %v1108_v48  ;;  %v1283_v62 = vpop.eup %1282 }
 0x1a4   :  { %v727_v0 = vpop.f32.mrf.mxu0 }
 0x1a5   :  { %828 = vrot.lane.b32.xlu0 %v718_v52, %s1333_s25  ;;  %834 = vrot.lane.b32.xlu1 %v733_v63, %s1333_s25  ;;  %v728_v3 = vadd.f32 %v1108_v48, %v727_v0  ;;  %v1102_v0 = vmul.f32 -1.442695, %v1595_v38 }
 0x1a6   :  { %v1247_v1 = vpop.f32.mrf.mxu0 }
 0x1a7   :  { %v743_v8 = vadd.f32 %v1247_v1, %v1108_v48 }
 0x1a8   :  { %v737_v4 = vpop.f32.mrf.mxu0 }
 0x1a9   :  { %892 = vrot.lane.b32.xlu0 %v718_v52, %s1332_s24  ;;  %898 = vrot.lane.b32.xlu1 %v733_v63, %s1332_s24  ;;  %v738_v6 = vadd.f32 %v1108_v48, %v737_v4  ;;  %v1285_v63 = vpop.eup %1284 }
 0x1aa   :  { %v1250_v9 = vpop.f32.mrf.mxu0  ;;  %v1287_v1 = vpop.eup %1286 }
 0x1ab   :  { %v753_v13 = vadd.f32 %v1250_v9, %v1108_v48  ;;  %v1289_v4 = vpop.eup %1288  ;;  %v796_v9 = vsub.f32 1.0, %v1287_v1 }
 0x1ac   :  { %v747_v10 = vpop.f32.mrf.mxu0 }
 0x1ad   :  { %896 = vrot.lane.b32.xlu0 %v728_v3, %s1332_s24  ;;  %832 = vrot.lane.b32.xlu1 %v728_v3, %s1333_s25  ;;  %v748_v11 = vadd.f32 %v1108_v48, %v747_v10  ;;  %v550_v10 = vadd.f32 1.0, %v1283_v62 }
 0x1ae   :  { %v1253_v14 = vpop.f32.mrf.mxu0 }
 0x1af   :  { %v763_v17 = vadd.f32 %v1253_v14, %v1108_v48  ;;  %v1291_v14 = vpop.eup %1290 }
 0x1b0   :  { %v757_v15 = vpop.f32.mrf.mxu0 }
 0x1b1   :  { %836 = vrot.lane.b32.xlu0 %v738_v6, %s1333_s25  ;;  %838 = vrot.lane.b32.xlu1 %v743_v8, %s1333_s25  ;;  %v758_v16 = vadd.f32 %v1108_v48, %v757_v15 }
 0x1b2   :  { %v1256_v19 = vpop.f32.mrf.mxu0 }
 0x1b3   :  { %v773_v23 = vadd.f32 %v1256_v19, %v1108_v48 }
 0x1b4   :  { %v767_v20 = vpop.f32.mrf.mxu0 }
 0x1b5   :  { %900 = vrot.lane.b32.xlu0 %v738_v6, %s1332_s24  ;;  %902 = vrot.lane.b32.xlu1 %v743_v8, %s1332_s24  ;;  %v768_v21 = vadd.f32 %v1108_v48, %v767_v20  ;;  %v549_v8 = vadd.f32 1.0, %v1285_v63 }
 0x1b6   :  { %v1259_v24 = vpop.f32.mrf.mxu0 }
 0x1b7   :  { %v783_v27 = vadd.f32 %v1259_v24, %v1108_v48 }
 0x1b8   :  { %v777_v25 = vpop.f32.mrf.mxu0 }
 0x1b9   :  { %840 = vrot.lane.b32.xlu0 %v748_v11, %s1333_s25  ;;  %842 = vrot.lane.b32.xlu1 %v753_v13, %s1333_s25  ;;  %v778_v26 = vadd.f32 %v1108_v48, %v777_v25  ;;  %v798_v25 = vsub.f32 1.0, %v1291_v14 }
 0x1ba   :  { %v1262_v30 = vpop.f32.mrf.mxu0 }
 0x1bb   :  { %v793_v33 = vadd.f32 %v1262_v30, %v1108_v48 }
 0x1bc   :  { %v787_v31 = vpop.f32.mrf.mxu0 }
 0x1bd   :  { %904 = vrot.lane.b32.xlu0 %v748_v11, %s1332_s24  ;;  %906 = vrot.lane.b32.xlu1 %v753_v13, %s1332_s24  ;;  %v788_v32 = vadd.f32 %v1108_v48, %v787_v31  ;;  %v547_v48 = vadd.f32 1.0, %v1277_v12  ;;  %v799_v11 = vsub.f32 1.0, %v1289_v4 }
 0x1bf   :  { %1296 = vrcp.f32 %v547_v48 }
 0x1c0   :  { %1298 = vrcp.f32 %v548_v22 }
 0x1c1   :  { %844 = vrot.lane.b32.xlu0 %v758_v16, %s1333_s25  ;;  %846 = vrot.lane.b32.xlu1 %v763_v17, %s1333_s25  ;;  %1300 = vpow2.f32 %v1102_v0 }
 0x1c2   :  { %1302 = vpow2.f32 %v1103_v28 }
 0x1c3   :  { %1304 = vrcp.f32 %v549_v8 }
 0x1c4   :  { %1306 = vrcp.f32 %v550_v10 }
 0x1c5   :  { %908 = vrot.lane.b32.xlu0 %v758_v16, %s1332_s24  ;;  %910 = vrot.lane.b32.xlu1 %v763_v17, %s1332_s24  ;;  %1308 = vpow2.f32 %v1104_v36 }
 0x1c9   :  { %848 = vrot.lane.b32.xlu0 %v768_v21, %s1333_s25  ;;  %850 = vrot.lane.b32.xlu1 %v773_v23, %s1333_s25 }
 0x1cd   :  { %912 = vrot.lane.b32.xlu0 %v768_v21, %s1332_s24  ;;  %914 = vrot.lane.b32.xlu1 %v773_v23, %s1332_s24  ;;  %v1293_v21 = vpop.eup %1292  ;;  %v1105_v23 = vmul.f32 -1.442695, %v1602_v46 }
 0x1cf   :  { %1310 = vpow2.f32 %v1105_v23 }
 0x1d1   :  { %852 = vrot.lane.b32.xlu0 %v778_v26, %s1333_s25  ;;  %854 = vrot.lane.b32.xlu1 %v783_v27, %s1333_s25 }
 0x1d5   :  { %916 = vrot.lane.b32.xlu0 %v778_v26, %s1332_s24  ;;  %918 = vrot.lane.b32.xlu1 %v783_v27, %s1332_s24  ;;  %v1295_v27 = vpop.eup %1294 }
 0x1d6   :  { %v1297_v34 = vpop.eup %1296  ;;  %v552_v44 = vadd.f32 1.0, %v1295_v27 }
 0x1d7   :  { %v1299_v39 = vpop.eup %1298  ;;  %v800_v41 = vsub.f32 1.0, %v1297_v34 }
 0x1d8   :  { %v1301_v42 = vpop.eup %1300  ;;  %v801_v49 = vsub.f32 1.0, %v1299_v39 }
 0x1d9   :  { %856 = vrot.lane.b32.xlu0 %v788_v32, %s1333_s25  ;;  %858 = vrot.lane.b32.xlu1 %v793_v33, %s1333_s25  ;;  %v1303_v58 = vpop.eup %1302  ;;  %v553_v12 = vadd.f32 1.0, %v1301_v42 }
 0x1da   :  { %v554_v47 = vadd.f32 1.0, %v1303_v58 }
 0x1dd   :  { %920 = vrot.lane.b32.xlu0 %v788_v32, %s1332_s24  ;;  %922 = vrot.lane.b32.xlu1 %v793_v33, %s1332_s24  ;;  %v551_v33 = vadd.f32 1.0, %v1293_v21 }
 0x1df   :  { %1312 = vrcp.f32 %v551_v33 }
 0x1e0   :  { %1314 = vrcp.f32 %v552_v44 }
 0x1e1   :  { %1316 = vpow2.f32 %v1106_v40 }
 0x1e2   :  { %1318 = vpow2.f32 %v1107_v43 }
 0x1e3   :  { %1320 = vrcp.f32 %v553_v12 }
 0x1e4   :  { %1322 = vrcp.f32 %v554_v47 }
 0x213   :  { %v895_v59 = vpop.permute.xlu1 %894  ;;  %v831_v60 = vpop.permute.xlu0 %830 }
 0x214   :  { %v941_v61 = vmul.f32 %v1279_v53, %v895_v59  ;;  %v877_v52 = vmul.f32 %v831_v60, %v797_v18  ;;  %v1305_v53 = vpop.eup %1304 }
 0x215   :  { %v1307_v48 = vpop.eup %1306  ;;  %v802_v54 = vsub.f32 1.0, %v1305_v53 }
 0x216   :  { %v957_v29 = vadd.f32 %v941_v61, %v877_v52  ;;  %v1309_v22 = vpop.eup %1308  ;;  %v803_v59 = vsub.f32 1.0, %v1307_v48 }
 0x217   :  { %v829_v3 = vpop.permute.xlu0 %828  ;;  %v835_v6 = vpop.permute.xlu1 %834 }
 0x218   :  { %990 = vrot.lane.b32.xlu1 %v957_v29, %s1334_s6  ;;  %v876_v38 = vmul.f32 %v829_v3, %v796_v9  ;;  %v879_v17 = vmul.f32 %v835_v6, %v799_v11  ;;  %v1311_v61 = vpop.eup %1310 }
 0x219   :  { %v1313_v3 = vpop.eup %1312 }
 0x21a   :  { %v1315_v9 = vpop.eup %1314  ;;  %v804_v11 = vsub.f32 1.0, %v1313_v3 }
 0x21b   :  { %v893_v13 = vpop.permute.xlu0 %892  ;;  %v899_v15 = vpop.permute.xlu1 %898 }
 0x21c   :  { %v940_v16 = vmul.f32 %v1287_v1, %v893_v13  ;;  %v943_v19 = vmul.f32 %v1289_v4, %v899_v15  ;;  %v555_v1 = vadd.f32 1.0, %v1309_v22  ;;  %v556_v4 = vadd.f32 1.0, %v1311_v61  ;;  %v1317_v13 = vpop.eup %1316 }
 0x21d   :  { %v1319_v15 = vpop.eup %1318  ;;  %v557_v21 = vadd.f32 1.0, %v1317_v13 }
 0x21e   :  { %v956_v20 = vadd.f32 %v940_v16, %v876_v38  ;;  %v959_v24 = vadd.f32 %v943_v19, %v879_v17  ;;  %1324 = vrcp.f32 %v555_v1 }
 0x21f   :  { %v897_v26 = vpop.permute.xlu0 %896  ;;  %v833_v30 = vpop.permute.xlu1 %832  ;;  %1326 = vrcp.f32 %v556_v4 }
 0x220   :  { %v942_v31 = vmul.f32 %v1291_v14, %v897_v26  ;;  %988 = vrot.lane.b32.xlu0 %v956_v20, %s1334_s6  ;;  %v878_v32 = vmul.f32 %v833_v30, %v798_v25  ;;  %994 = vrot.lane.b32.xlu1 %v959_v24, %s1334_s6  ;;  %v805_v14 = vsub.f32 1.0, %v1315_v9  ;;  %v1321_v24 = vpop.eup %1320  ;;  %v558_v25 = vadd.f32 1.0, %v1319_v15 }
 0x221   :  { %v1323_v30 = vpop.eup %1322  ;;  %1328 = vrcp.f32 %v557_v21 }
 0x222   :  { %v958_v35 = vadd.f32 %v942_v31, %v878_v32  ;;  %v806_v32 = vsub.f32 1.0, %v1321_v24  ;;  %1330 = vrcp.f32 %v558_v25  ;;  %v807_v33 = vsub.f32 1.0, %v1323_v30 }
 0x223   :  { %v837_v37 = vpop.permute.xlu0 %836  ;;  %v839_v46 = vpop.permute.xlu1 %838 }
 0x224   :  { %992 = vrot.lane.b32.xlu0 %v958_v35, %s1334_s6  ;;  %v880_v2 = vmul.f32 %v837_v37, %v800_v41  ;;  %v881_v51 = vmul.f32 %v839_v46, %v801_v49 }
 0x227   :  { %v901_v56 = vpop.permute.xlu0 %900  ;;  %v903_v50 = vpop.permute.xlu1 %902 }
 0x228   :  { %v944_v45 = vmul.f32 %v1297_v34, %v901_v56  ;;  %v945_v5 = vmul.f32 %v1299_v39, %v903_v50 }
 0x22a   :  { %v960_v7 = vadd.f32 %v944_v45, %v880_v2  ;;  %v961_v55 = vadd.f32 %v945_v5, %v881_v51 }
 0x22b   :  { %v841_v57 = vpop.permute.xlu0 %840  ;;  %v843_v18 = vpop.permute.xlu1 %842 }
 0x22c   :  { %996 = vrot.lane.b32.xlu0 %v960_v7, %s1334_s6  ;;  %998 = vrot.lane.b32.xlu1 %v961_v55, %s1334_s6  ;;  %v882_v52 = vmul.f32 %v841_v57, %v802_v54  ;;  %v883_v0 = vmul.f32 %v843_v18, %v803_v59  ;;  %v1325_v41 = vpop.eup %1324 }
 0x22d   :  { %v1327_v49 = vpop.eup %1326  ;;  %v808_v58 = vsub.f32 1.0, %v1325_v41 }
 0x22e   :  { %v809_v2 = vsub.f32 1.0, %v1327_v49  ;;  %v1329_v47 = vpop.eup %1328 }
 0x22f   :  { %v905_v60 = vpop.permute.xlu0 %904  ;;  %v907_v62 = vpop.permute.xlu1 %906  ;;  %v810_v54 = vsub.f32 1.0, %v1329_v47 }
 0x230   :  { %v946_v63 = vmul.f32 %v1305_v53, %v905_v60  ;;  %v947_v29 = vmul.f32 %v1307_v48, %v907_v62  ;;  %v1331_v48 = vpop.eup %1330 }
 0x231   :  { %v811_v22 = vsub.f32 1.0, %v1331_v48 }
 0x232   :  { %v962_v28 = vadd.f32 %v946_v63, %v882_v52  ;;  %v963_v6 = vadd.f32 %v947_v29, %v883_v0 }
 0x233   :  { %v845_v8 = vpop.permute.xlu0 %844  ;;  %v847_v10 = vpop.permute.xlu1 %846 }
 0x234   :  { %1000 = vrot.lane.b32.xlu0 %v962_v28, %s1334_s6  ;;  %1002 = vrot.lane.b32.xlu1 %v963_v6, %s1334_s6  ;;  %v884_v16 = vmul.f32 %v845_v8, %v804_v11  ;;  %v885_v36 = vmul.f32 %v847_v10, %v805_v14 }
 0x237   :  { %v909_v38 = vpop.permute.xlu0 %908  ;;  %v911_v17 = vpop.permute.xlu1 %910 }
 0x238   :  { %v948_v19 = vmul.f32 %v1313_v3, %v909_v38  ;;  %v949_v20 = vmul.f32 %v1315_v9, %v911_v17 }
 0x23a   :  { %v964_v23 = vadd.f32 %v948_v19, %v884_v16  ;;  %v965_v26 = vadd.f32 %v949_v20, %v885_v36 }
 0x23b   :  { %v849_v27 = vpop.permute.xlu0 %848  ;;  %v851_v31 = vpop.permute.xlu1 %850 }
 0x23c   :  { %1004 = vrot.lane.b32.xlu0 %v964_v23, %s1334_s6  ;;  %1006 = vrot.lane.b32.xlu1 %v965_v26, %s1334_s6  ;;  %v886_v44 = vmul.f32 %v849_v27, %v806_v32  ;;  %v887_v39 = vmul.f32 %v851_v31, %v807_v33 }
 0x23f   :  { %v913_v34 = vpop.permute.xlu0 %912  ;;  %v915_v35 = vpop.permute.xlu1 %914 }
 0x240   :  { %v950_v37 = vmul.f32 %v1321_v24, %v913_v34  ;;  %v951_v46 = vmul.f32 %v1323_v30, %v915_v35 }
 0x242   :  { %v966_v40 = vadd.f32 %v950_v37, %v886_v44  ;;  %v967_v42 = vadd.f32 %v951_v46, %v887_v39 }
 0x243   :  { %v853_v43 = vpop.permute.xlu0 %852  ;;  %v855_v56 = vpop.permute.xlu1 %854 }
 0x244   :  { %1008 = vrot.lane.b32.xlu0 %v966_v40, %s1334_s6  ;;  %1010 = vrot.lane.b32.xlu1 %v967_v42, %s1334_s6  ;;  %v888_v45 = vmul.f32 %v853_v43, %v808_v58  ;;  %v889_v12 = vmul.f32 %v855_v56, %v809_v2 }
 0x247   :  { %v917_v50 = vpop.permute.xlu0 %916  ;;  %v919_v51 = vpop.permute.xlu1 %918 }
 0x248   :  { %v952_v5 = vmul.f32 %v1325_v41, %v917_v50  ;;  %v953_v7 = vmul.f32 %v1327_v49, %v919_v51 }
 0x24a   :  { %v968_v53 = vadd.f32 %v952_v5, %v888_v45  ;;  %v969_v55 = vadd.f32 %v953_v7, %v889_v12 }
 0x24b   :  { %v857_v57 = vpop.permute.xlu0 %856  ;;  %v859_v18 = vpop.permute.xlu1 %858 }
 0x24c   :  { %1012 = vrot.lane.b32.xlu0 %v968_v53, %s1334_s6  ;;  %1014 = vrot.lane.b32.xlu1 %v969_v55, %s1334_s6  ;;  %v890_v60 = vmul.f32 %v857_v57, %v810_v54  ;;  %v891_v62 = vmul.f32 %v859_v18, %v811_v22 }
 0x24f   :  { %v921_v59 = vpop.permute.xlu0 %920  ;;  %v923_v61 = vpop.permute.xlu1 %922 }
 0x250   :  { %v954_v52 = vmul.f32 %v1329_v47, %v921_v59  ;;  %v955_v63 = vmul.f32 %v1331_v48, %v923_v61 }
 0x252   :  { %v970_v0 = vadd.f32 %v954_v52, %v890_v60  ;;  %v971_v29 = vadd.f32 %v955_v63, %v891_v62 }
 0x254   :  { %1016 = vrot.lane.b32.xlu0 %v970_v0, %s1334_s6  ;;  %1018 = vrot.lane.b32.xlu1 %v971_v29, %s1334_s6 }
 0x28a   :  { %v991_v1 = vpop.permute.xlu1 %990 }
 0x28b   :  { %1038 = vst.msk [vmem:[%s1763_s7 + $0x8] sm:$0xff] %vm1036_vm5, %v991_v1 }
 0x292   :  { %v989_v28 = vpop.permute.xlu0 %988  ;;  %v995_v3 = vpop.permute.xlu1 %994 }
 0x293   :  { %1037 = vst.msk [vmem:[%s1763_s7] sm:$0xff] %vm1036_vm5, %v989_v28  ;;  %1040 = vst.msk [vmem:[%s1763_s7 + $0x18] sm:$0xff] %vm1036_vm5, %v995_v3 }
 0x296   :  { %v993_v4 = vpop.permute.xlu0 %992 }
 0x297   :  { %1039 = vst.msk [vmem:[%s1763_s7 + $0x10] sm:$0xff] %vm1036_vm5, %v993_v4 }
 0x29e   :  { %v997_v6 = vpop.permute.xlu0 %996  ;;  %v999_v8 = vpop.permute.xlu1 %998 }
 0x29f   :  { %1041 = vst.msk [vmem:[%s1763_s7 + $0x20] sm:$0xff] %vm1036_vm5, %v997_v6  ;;  %1042 = vst.msk [vmem:[%s1763_s7 + $0x28] sm:$0xff] %vm1036_vm5, %v999_v8 }
 0x2a6   :  { %v1001_v9 = vpop.permute.xlu0 %1000  ;;  %v1003_v10 = vpop.permute.xlu1 %1002 }
 0x2a7   :  { %1043 = vst.msk [vmem:[%s1763_s7 + $0x30] sm:$0xff] %vm1036_vm5, %v1001_v9  ;;  %1044 = vst.msk [vmem:[%s1763_s7 + $0x38] sm:$0xff] %vm1036_vm5, %v1003_v10 }
 0x2ae   :  { %v1005_v11 = vpop.permute.xlu0 %1004  ;;  %v1007_v13 = vpop.permute.xlu1 %1006 }
 0x2af   :  { %1045 = vst.msk [vmem:[%s1763_s7 + $0x40] sm:$0xff] %vm1036_vm5, %v1005_v11  ;;  %1046 = vst.msk [vmem:[%s1763_s7 + $0x48] sm:$0xff] %vm1036_vm5, %v1007_v13 }
 0x2b6   :  { %v1009_v14 = vpop.permute.xlu0 %1008  ;;  %v1011_v38 = vpop.permute.xlu1 %1010 }
 0x2b7   :  { %1047 = vst.msk [vmem:[%s1763_s7 + $0x50] sm:$0xff] %vm1036_vm5, %v1009_v14  ;;  %1048 = vst.msk [vmem:[%s1763_s7 + $0x58] sm:$0xff] %vm1036_vm5, %v1011_v38 }
 0x2be   :  { %v1013_v15 = vpop.permute.xlu0 %1012  ;;  %v1015_v16 = vpop.permute.xlu1 %1014 }
 0x2bf   :  { %1049 = vst.msk [vmem:[%s1763_s7 + $0x60] sm:$0xff] %vm1036_vm5, %v1013_v15  ;;  %1050 = vst.msk [vmem:[%s1763_s7 + $0x68] sm:$0xff] %vm1036_vm5, %v1015_v16 }
 0x2c6   :  { %v1017_v17 = vpop.permute.xlu0 %1016  ;;  %v1019_v19 = vpop.permute.xlu1 %1018 }
 0x2c7   :  { %1051 = vst.msk [vmem:[%s1763_s7 + $0x70] sm:$0xff] %vm1036_vm5, %v1017_v17  ;;  %1052 = vst.msk [vmem:[%s1763_s7 + $0x78] sm:$0xff] %vm1036_vm5, %v1019_v19 }

</bundles_post_ra>
